<compile_context>
chip_gen: v6e
topology: v6e:2x2x1
jax: 0.10.0
libtpu: 0.0.40
codegen_flags: <defaults>
</compile_context>

<pallas_src>
import functools
from typing import NamedTuple, Optional

import jax
import jax.numpy as jnp
from jax.experimental import pallas as pl
from jax.experimental.pallas import tpu as pltpu


# ---------------------------------------------------------------------------
# One-time chip detection (generation-aware VMEM budget / core count)
# ---------------------------------------------------------------------------

def _detect_chip():
    kind = ""
    try:
        kind = jax.devices()[0].device_kind.lower()
    except Exception:
        pass
    if "v5 lite" in kind or "v5lite" in kind or "v5e" in kind:
        gen, phys, scoped, cores = "v5e", 128 << 20, 16 << 20, 1
    elif "v6" in kind:
        gen, phys, scoped, cores = "v6e", 128 << 20, 32 << 20, 1
    elif "7" in kind:
        gen, phys, scoped, cores = "v7x", 64 << 20, 32 << 20, 2
    elif "v5" in kind or "v4" in kind:
        gen, phys, scoped, cores = "other", 128 << 20, 16 << 20, 1
    else:
        # Unknown chip: be conservative.
        gen, phys, scoped, cores = "other", 64 << 20, 16 << 20, 1
    try:  # prefer the real number when the query is available
        phys = int(pltpu.get_tpu_info().vmem_capacity_bytes)
    except Exception:
        pass
    return gen, phys, scoped, cores


_CHIP_GEN, _VMEM_PHYS, _VMEM_DEFAULT_SCOPED, _NUM_PARALLEL_CORES = _detect_chip()
_VMEM_CAP = int(0.75 * _VMEM_PHYS)   # ~48 MiB on v7x, ~96 MiB on v5e/v6e


# ---------------------------------------------------------------------------
# Kernels
# ---------------------------------------------------------------------------

def _kernel_single(x_ref, w_ref, b_ref, o_ref):
    """No K-grid axis: one MXU pass per (i, j) tile, bias fused, no scratch."""
    o_ref[...] = (
        jnp.dot(x_ref[...], w_ref[...], preferred_element_type=jnp.float32)
        + b_ref[...]
    ).astype(o_ref.dtype)


def _kernel_single_nobias(x_ref, w_ref, o_ref):
    o_ref[...] = jnp.dot(
        x_ref[...], w_ref[...], preferred_element_type=jnp.float32
    ).astype(o_ref.dtype)


def _kernel_acc_inplace(x_ref, w_ref, b_ref, o_ref):
    """K-reduction, f32 output: accumulate directly into the resident o tile."""
    k = pl.program_id(2)

    @pl.when(k == 0)
    def _():
        o_ref[...] = jnp.zeros_like(o_ref)

    o_ref[...] += jnp.dot(x_ref[...], w_ref[...],
                          preferred_element_type=jnp.float32)

    @pl.when(k == pl.num_programs(2) - 1)
    def _():
        o_ref[...] += b_ref[...]


def _kernel_acc_inplace_nobias(x_ref, w_ref, o_ref):
    k = pl.program_id(2)

    @pl.when(k == 0)
    def _():
        o_ref[...] = jnp.zeros_like(o_ref)

    o_ref[...] += jnp.dot(x_ref[...], w_ref[...],
                          preferred_element_type=jnp.float32)


def _kernel_acc_scratch(x_ref, w_ref, b_ref, o_ref, acc_ref):
    """K-reduction, non-f32 output: f32 scratch accumulator, cast at the end."""
    k = pl.program_id(2)

    @pl.when(k == 0)
    def _():
        acc_ref[...] = jnp.zeros_like(acc_ref)

    acc_ref[...] += jnp.dot(x_ref[...], w_ref[...],
                            preferred_element_type=jnp.float32)

    @pl.when(k == pl.num_programs(2) - 1)
    def _():
        o_ref[...] = (acc_ref[...] + b_ref[...]).astype(o_ref.dtype)


def _kernel_acc_scratch_nobias(x_ref, w_ref, o_ref, acc_ref):
    k = pl.program_id(2)

    @pl.when(k == 0)
    def _():
        acc_ref[...] = jnp.zeros_like(acc_ref)

    acc_ref[...] += jnp.dot(x_ref[...], w_ref[...],
                            preferred_element_type=jnp.float32)

    @pl.when(k == pl.num_programs(2) - 1)
    def _():
        o_ref[...] = acc_ref[...].astype(o_ref.dtype)


# ---------------------------------------------------------------------------
# Helpers
# ---------------------------------------------------------------------------

def _cdiv(a, b):
    return (a + b - 1) // b


def _round_up(v, m):
    return _cdiv(v, m) * m


def _divisor_tile(dim, target):
    """dim is a multiple of 128. Largest multiple of 128 that divides dim and
    is <= target (falls back to 128)."""
    if dim <= target:
        return dim
    units = dim // 128
    best = 1
    for d in range(1, max(1, target // 128) + 1):
        if units % d == 0:
            best = d
    return 128 * best


def _weight_spec(block_shape, index_map, buffers):
    """Weight BlockSpec, optionally with a deeper pipeline (v5e)."""
    if buffers > 2 and hasattr(pl, "Buffered"):
        try:
            return pl.BlockSpec(block_shape, index_map,
                                pipeline_mode=pl.Buffered(buffers))
        except TypeError:
            pass
    return pl.BlockSpec(block_shape, index_map)


# ---------------------------------------------------------------------------
# Parameter preparation (runs ONCE, at init — never in the per-step hot path)
# ---------------------------------------------------------------------------

class RowParallelLinearParams(NamedTuple):
    weight_t: jax.Array            # (K_pad, N_pad), compute dtype, lane-dense
    bias: Optional[jax.Array]      # (1, N_pad) float32, or None
    n_out: int                     # original output_size
    k_in: int                      # original input_size (per partition)


def prepare_row_parallel_linear(weight, bias=None, *, compute_dtype=None):
    """One-time prep of the PyTorch-layout (output_size, input_size) weight.

    Transposes to (K, N), casts to the MXU compute dtype (e.g. bf16 for the
    v6e/v7x fast path) and pads K and N to multiples of 128 so the per-call
    hot path never touches the weight in HBM and the output stays lane-dense.
    """
    weight = jnp.asarray(weight)
    n_out, k_in = weight.shape
    cdtype = jnp.dtype(compute_dtype) if compute_dtype is not None else weight.dtype
    k_pad = _round_up(k_in, 128)
    n_pad = _round_up(n_out, 128)
    wt = weight.T.astype(cdtype)
    if (k_pad, n_pad) != (k_in, n_out):
        wt = jnp.pad(wt, ((0, k_pad - k_in), (0, n_pad - n_out)))
    b2d = None
    if bias is not None:
        b2d = jnp.asarray(bias, jnp.float32).reshape(1, n_out)
        if n_pad != n_out:
            b2d = jnp.pad(b2d, ((0, 0), (0, n_pad - n_out)))
    return RowParallelLinearParams(wt, b2d, n_out, k_in)


# ---------------------------------------------------------------------------
# Per-call wrapper (hot path)
# ---------------------------------------------------------------------------

@functools.partial(jax.jit, static_argnames=("n_out", "tm", "tn", "tk"))
def _row_parallel_linear_call(x, weight_t, bias2d, *, n_out,
                              tm=None, tn=None, tk=None):
    has_bias = bias2d is not None
    orig_shape = x.shape
    K = orig_shape[-1]
    K_pad, N_pad = weight_t.shape

    M = 1
    for d in orig_shape[:-1]:
        M *= d

    out_dtype = x.dtype
    cdtype = weight_t.dtype
    in_b = jnp.dtype(cdtype).itemsize
    out_b = jnp.dtype(out_dtype).itemsize
    sub_align = max(8, 32 // in_b)          # 8 f32, 16 bf16, 32 int8/fp8

    x2d = x.reshape(M, K)
    if x2d.dtype != cdtype:
        # TODO(synk): when compute_dtype=bf16 is used with f32 activations the
        # operands are downcast before the MXU (accumulation stays f32).
        x2d = x2d.astype(cdtype)

    # ---- tile targets (generation-tuned defaults, shrunk to the VMEM budget)
    tm_t = tm if tm is not None else 512
    tn_t = tn if tn is not None else 1024
    tk_t = tk if tk is not None else 1024
    weight_buffers = 3 if _CHIP_GEN == "v5e" else 2

    def derive(tm_t, tn_t, tk_t):
        if M <= tm_t:
            tm_e, M_pad = M, M
        else:
            nmb = _cdiv(M, tm_t)
            tm_e = _round_up(_cdiv(M, nmb), sub_align)
            M_pad = tm_e * nmb
        tk_e = _divisor_tile(K_pad, tk_t)
        tn_e = _divisor_tile(N_pad, tn_t)
        return tm_e, M_pad, tk_e, tn_e

    def vmem_est(tm_e, tn_e, tk_e, use_scratch, wbuf):
        return (2 * tm_e * tk_e * in_b
                + wbuf * tk_e * tn_e * in_b
                + (2 * tn_e * 4 if has_bias else 0)
                + 2 * tm_e * tn_e * out_b
                + (tm_e * tn_e * 4 if use_scratch else 0))

    for _ in range(10):
        tm_e, M_pad, tk_e, tn_e = derive(tm_t, tn_t, tk_t)
        gk = K_pad // tk_e
        use_scratch = (gk > 1) and (out_dtype != jnp.float32)
        wbuf = weight_buffers if gk > 1 else 2
        est = vmem_est(tm_e, tn_e, tk_e, use_scratch, wbuf)
        if est <= _VMEM_CAP:
            break
        if tk_t > 256 and tk_t >= max(tm_t, tn_t):
            tk_t //= 2
        elif tn_t > 256:
            tn_t //= 2
        elif tm_t > 128:
            tm_t //= 2
        elif tk_t > 256:
            tk_t //= 2
        else:
            break

    gm, gn = M_pad // tm_e, N_pad // tn_e

    # ---- v7x megacore: make sure the parallel axes expose >= 2 programs.
    if _NUM_PARALLEL_CORES > 1 and gm * gn < _NUM_PARALLEL_CORES and N_pad >= 256:
        tn_e = _divisor_tile(N_pad, max(128, (N_pad // 256) * 128))
        gn = N_pad // tn_e
        est = vmem_est(tm_e, tn_e, tk_e, use_scratch, wbuf)

    # ---- per-call x padding only (weight/bias were padded once at init).
    if M_pad != M or K_pad != K:
        x2d = jnp.pad(x2d, ((0, M_pad - M), (0, K_pad - K)))

    cp_kwargs = {}
    if est > _VMEM_DEFAULT_SCOPED:
        cp_kwargs["vmem_limit_bytes"] = int(
            min(max(int(est * 1.25), _VMEM_DEFAULT_SCOPED), _VMEM_CAP))

    cost = pl.CostEstimate(
        flops=2 * M_pad * N_pad * K_pad,
        transcendentals=0,
        bytes_accessed=(M_pad * K_pad * in_b * gn           # x re-read per j
                        + K_pad * N_pad * in_b * gm         # W re-read per i
                        + (N_pad * 4 * gm if has_bias else 0)
                        + M_pad * N_pad * out_b),
    )

    if gk == 1:
        grid = (gm, gn)
        x_spec = pl.BlockSpec((tm_e, tk_e), lambda i, j: (i, 0))
        w_spec = pl.BlockSpec((tk_e, tn_e), lambda i, j: (0, j))
        b_spec = pl.BlockSpec((1, tn_e), lambda i, j: (0, j))
        out_spec = pl.BlockSpec((tm_e, tn_e), lambda i, j: (i, j))
        dims = ("parallel", "parallel")
        scratch = []
        kernel = _kernel_single if has_bias else _kernel_single_nobias
    else:
        grid = (gm, gn, gk)
        x_spec = pl.BlockSpec((tm_e, tk_e), lambda i, j, k: (i, k))
        w_spec = _weight_spec((tk_e, tn_e), lambda i, j, k: (k, j), wbuf)
        b_spec = pl.BlockSpec((1, tn_e), lambda i, j, k: (0, j))
        out_spec = pl.BlockSpec((tm_e, tn_e), lambda i, j, k: (i, j))
        dims = ("parallel", "parallel", "arbitrary")
        if out_dtype == jnp.float32:
            scratch = []
            kernel = _kernel_acc_inplace if has_bias else _kernel_acc_inplace_nobias
        else:
            scratch = [pltpu.VMEM((tm_e, tn_e), jnp.float32)]
            kernel = _kernel_acc_scratch if has_bias else _kernel_acc_scratch_nobias

    in_specs = [x_spec, w_spec] + ([b_spec] if has_bias else [])
    operands = (x2d, weight_t) + ((bias2d,) if has_bias else ())

    out = pl.pallas_call(
        kernel,
        out_shape=jax.ShapeDtypeStruct((M_pad, N_pad), out_dtype),
        grid_spec=pltpu.PrefetchScalarGridSpec(
            num_scalar_prefetch=0,
            grid=grid,
            in_specs=in_specs,
            out_specs=out_spec,
            scratch_shapes=scratch,
        ),
        compiler_params=pltpu.CompilerParams(
            dimension_semantics=dims, **cp_kwargs),
        cost_estimate=cost,
    )(*operands)

    if M_pad != M or N_pad != n_out:
        out = out[:M, :n_out]
    return out.reshape(orig_shape[:-1] + (n_out,))


def row_parallel_linear(x, params: RowParallelLinearParams, *, tm=None, tn=None, tk=None):
    """y = x @ W.T (+ bias).  world_size == 1 => the all-reduce is the identity."""
    return _row_parallel_linear_call(x, params.weight_t, params.bias,
                                     n_out=params.n_out, tm=tm, tn=tn, tk=tk)


class RowParallelLinear:
    """Minimal JAX analogue of the torch module (world_size == 1)."""

    def __init__(self, weight, bias=None, *, compute_dtype=None):
        self.params = prepare_row_parallel_linear(weight, bias,
                                                  compute_dtype=compute_dtype)

    def __call__(self, x, **kw):
        return row_parallel_linear(x, self.params, **kw)


# ---------------------------------------------------------------------------
# Demo / correctness checks
# ---------------------------------------------------------------------------

if __name__ == "__main__":
    key = jax.random.PRNGKey(0)
    kx, kw, kx2, kw2, kb2, kx4, kw4 = jax.random.split(key, 7)

    # --- primary shape: batch=2, seq=8, hidden 256 -> 128, f32, zero bias ----
    batch, seq = 2, 8
    input_size, output_size = 256, 128
    x = jax.random.normal(kx, (batch, seq, input_size), dtype=jnp.float32)
    weight = jax.random.normal(kw, (output_size, input_size), jnp.float32) * 0.02
    bias = jnp.zeros((output_size,), jnp.float32)                 # bias.zero_()

    layer = RowParallelLinear(weight, bias)                       # init-time prep
    y = jax.block_until_ready(layer(x))
    y_ref = x @ weight.T + bias
    assert y.shape == (batch, seq, output_size)
    assert jnp.allclose(y, y_ref, atol=1e-4, rtol=1e-4)

    # --- multi-tile / multi-K path, f32 (in-place output accumulation) ------
    x2 = jax.random.normal(kx2, (4, 32, 512), dtype=jnp.float32)
    w2 = jax.random.normal(kw2, (384, 512), jnp.float32) * 0.02
    b2 = jax.random.normal(kb2, (384,), jnp.float32) * 0.1
    p2 = prepare_row_parallel_linear(w2, b2)
    y2 = jax.block_until_ready(row_parallel_linear(x2, p2, tm=64, tn=128, tk=256))
    y2_ref = x2 @ w2.T + b2
    assert jnp.allclose(y2, y2_ref, atol=1e-3, rtol=1e-3)

    # --- bf16 MXU path, multi-K (f32 scratch accumulator, bf16 output) ------
    x3 = x2.astype(jnp.bfloat16)
    p3 = prepare_row_parallel_linear(w2, b2, compute_dtype=jnp.bfloat16)
    y3 = jax.block_until_ready(row_parallel_linear(x3, p3, tm=64, tn=128, tk=256))
    y3_ref = (x3.astype(jnp.float32) @ w2.T.astype(jnp.float32) + b2).astype(jnp.bfloat16)
    assert jnp.allclose(y3.astype(jnp.float32), y3_ref.astype(jnp.float32),
                        atol=5e-2, rtol=5e-2)

    # --- non-128 K and N (padding handled at init for W, per-call for x) ----
    x4 = jax.random.normal(kx4, (2, 20, 300), dtype=jnp.float32)
    w4 = jax.random.normal(kw4, (96, 300), jnp.float32) * 0.02
    b4 = jnp.zeros((96,), jnp.float32)
    p4 = prepare_row_parallel_linear(w4, b4)
    y4 = jax.block_until_ready(row_parallel_linear(x4, p4))
    y4_ref = x4 @ w4.T + b4
    assert y4.shape == (2, 20, 96)
    assert jnp.allclose(y4, y4_ref, atol=1e-3, rtol=1e-3)

    # --- no-bias fast path ----------------------------------------------------
    p5 = prepare_row_parallel_linear(w4, None)
    y5 = jax.block_until_ready(row_parallel_linear(x4, p5))
    assert jnp.allclose(y5, x4 @ w4.T, atol=1e-3, rtol=1e-3)

    print("KERNEL_OK")
</pallas_src>

<mosaic_0001>
module attributes {stable_mosaic.version = 11 : i64} {
  func.func @_kernel_single(%arg0: i32, %arg1: i32, %arg2: memref<16x256xf32, #tpu.memory_space<vmem>>, %arg3: memref<256x128xf32, #tpu.memory_space<vmem>>, %arg4: memref<1x128xf32, #tpu.memory_space<vmem>>, %arg5: memref<16x128xf32, #tpu.memory_space<vmem>>) attributes {dimension_semantics = [#tpu.dimension_semantics<parallel>, #tpu.dimension_semantics<parallel>], iteration_bounds = array<i64: 1, 1>, scalar_prefetch = 0 : i64, scratch_operands = 0 : i64, tpu.core_type = #tpu.core_type<tc>, window_params = [{transform_indices = @transform_0, window_bounds = array<i64: 16, 256>}, {transform_indices = @transform_1, window_bounds = array<i64: 256, 128>}, {transform_indices = @transform_2, window_bounds = array<i64: 1, 128>}, {transform_indices = @transform_3, window_bounds = array<i64: 16, 128>}]} {
    %c0 = arith.constant 0 : index
    %c0_0 = arith.constant 0 : index
    %0 = vector.load %arg2[%c0, %c0_0] : memref<16x256xf32, #tpu.memory_space<vmem>>, vector<16x256xf32>
    %c0_1 = arith.constant 0 : index
    %c0_2 = arith.constant 0 : index
    %1 = vector.load %arg3[%c0_1, %c0_2] : memref<256x128xf32, #tpu.memory_space<vmem>>, vector<256x128xf32>
    %cst = arith.constant dense<0.000000e+00> : vector<16x128xf32>
    %2 = tpu.matmul %0, %1, %cst {dimension_numbers = #tpu.dot_dimension_numbers<[1], [0], [0], [1], [0, 0, 1, 1], [], []>} : vector<16x256xf32>, vector<256x128xf32>, vector<16x128xf32> -> vector<16x128xf32>
    %c0_3 = arith.constant 0 : index
    %c0_4 = arith.constant 0 : index
    %3 = vector.load %arg4[%c0_3, %c0_4] : memref<1x128xf32, #tpu.memory_space<vmem>>, vector<1x128xf32>
    %4 = vector.broadcast %3 : vector<1x128xf32> to vector<16x128xf32>
    %5 = arith.addf %2, %4 : vector<16x128xf32>
    %c0_5 = arith.constant 0 : index
    %c0_6 = arith.constant 0 : index
    %6 = vector.load %arg5[%c0_5, %c0_6] : memref<16x128xf32, #tpu.memory_space<vmem>>, vector<16x128xf32>
    tpu.vector_store %arg5[%c0_5, %c0_6], %5 {strides = array<i32>} : memref<16x128xf32, #tpu.memory_space<vmem>>, vector<16x128xf32>,
    return
  }
  func.func @transform_0(%arg0: i32, %arg1: i32) -> (i32, i32) {
    %c0_i32 = arith.constant 0 : i32
    %c0_i32_0 = arith.constant 0 : i32
    return %arg0, %c0_i32 : i32, i32
  }
  func.func @transform_1(%arg0: i32, %arg1: i32) -> (i32, i32) {
    %c0_i32 = arith.constant 0 : i32
    %c0_i32_0 = arith.constant 0 : i32
    return %c0_i32, %arg1 : i32, i32
  }
  func.func @transform_2(%arg0: i32, %arg1: i32) -> (i32, i32) {
    %c0_i32 = arith.constant 0 : i32
    %c0_i32_0 = arith.constant 0 : i32
    return %c0_i32, %arg1 : i32, i32
  }
  func.func @transform_3(%arg0: i32, %arg1: i32) -> (i32, i32) {
    %c0_i32 = arith.constant 0 : i32
    return %arg0, %arg1 : i32, i32
  }
}

</mosaic_0001>

<bundles_post_ra>
// kernel: _row_parallel_linear_call.1
= control target key start
LH: loop header
LB: loop body
LE: loop exit
PB: predicated region body
PF: predicated region fallthrough
CT: control target
= control target key end

     0   :  { %8 = vsyncpa [#allocation3], 0  ;;  %s370_s0 = inlined_call_operand.hbm [shape: f32[16,256], index: 0, kind: input, shape index: {}]   ;;  %s371_s1 = inlined_call_operand.hbm [shape: f32[256,128], index: 1, kind: input, shape index: {}]   ;;  %s372_s2 = inlined_call_operand.vmem [shape: f32[1,128], index: 2, kind: input, shape index: {}]   ;;  %s373_s3 = inlined_call_operand.hbm [shape: f32[16,128], index: 3, kind: output, shape index: {}]  }
   0x1   :  { %9 = vsyncpa [#allocation6], 0 }
   0x2   :  { %10 = vsyncpa [#allocation4], 0  ;;  %s325_s12 = smov [#allocation2]  }
   0x3   :  { %s16_s13 = sshll.u32 %s325_s12, 4  ;;  %s17_s13 = int_to_ptr.vmem [resolvable:$true] %s16_s13 }
   0x4   :  { %s267_s14 = scalar_lea.vmem %s17_s13, 512  ;;  %p272_p1 = scmp.lt.s32.totalorder %s17_s13, %s17_s13 }
   0x5   :  { %p268_p0 = scmp.ne.s32.totalorder %s17_s13, %s267_s14  ;;  %p273_p2 = scmp.lt.s32.totalorder %s267_s14, %s267_s14 }
   0x7   :  { %p274_p3 = por %p273_p2, %p272_p1 }
   0x9   :  { %p275_p4 = pnand %p274_p3, %p268_p0 }
   0xb   :  { %278 = shalt.err (!%p275_p4)
}
   0xc   :  { %s326_s15 = smov 256   ;;  %s327_s16 = smov 16  }
   0xd   :  { %22 = dma.hbm_to_vmem [thread:$0]  %s370_s0, 512, %s17_s13, [#allocation3], %s326_s15, %s326_s15, %s327_s16  }
   0xe   :  { %s328_s19 = smov [#allocation5]  }
   0xf   :  { %s28_s20 = sshll.u32 %s328_s19, 4  ;;  %s29_s20 = int_to_ptr.vmem [resolvable:$true] %s28_s20 }
  0x10   :  { %s287_s21 = scalar_lea.vmem %s29_s20, 4096  ;;  %p292_p6 = scmp.lt.s32.totalorder %s29_s20, %s29_s20 }
  0x11   :  { %p288_p5 = scmp.ne.s32.totalorder %s29_s20, %s287_s21  ;;  %p293_p7 = scmp.lt.s32.totalorder %s287_s21, %s287_s21 }
  0x13   :  { %p294_p8 = por %p293_p7, %p292_p6 }
  0x15   :  { %p295_p9 = pnand %p294_p8, %p288_p5 }
  0x17   :  { %298 = shalt.err (!%p295_p9)
}
  0x18   :  { %s329_s22 = smov 128   ;;  %s330_s23 = smov 8  }
  0x19   :  { %34 = dma.hbm_to_vmem [thread:$0]  %s371_s1, 4096, %s29_s20, [#allocation6], %s329_s22, %s329_s22, %s330_s23  }
  0x1a   :  { %319 = dma.done.wait [#allocation3], 512  }
  0x1b   :  { %320 = vsyncadd [#allocation3], 4294966784 }
  0x1c   :  { %321 = dma.done.wait [#allocation6], 4096  }
  0x1d   :  { %322 = vsyncadd [#allocation6], 4294963200  ;;  %v78_v0 = vld [vmem:[#allocation5 + $0xf8] sm:$0xff]  ;;  %v77_v2 = vld [vmem:[#allocation5 + $0xf0] sm:$0xff]  ;;  %s331_s26 = smov [#allocation7]  }
  0x1e   :  { %v62_v1 = vld [vmem:[#allocation5 + $0x78] sm:$0xff]  ;;  %182 = vmatprep.subr.mxu0 %v78_v0  ;;  %220 = vmatprep.subr.mxu1 %v78_v0  ;;  %v61_v3 = vld [vmem:[#allocation5 + $0x70] sm:$0xff]  ;;  %v76_v4 = vld [vmem:[#allocation5 + $0xe8] sm:$0xff]  ;;  %s168_s27 = sshll.u32 %s331_s26, 4  ;;  %s169_s27 = int_to_ptr.vmem [resolvable:$true] %s168_s27 }
  0x1f   :  { %183 = vmatpush3.msra.mxu0 %v62_v1  ;;  %236 = vmatpush3.msra.mxu1 %v62_v1  ;;  %v60_v5 = vld [vmem:[#allocation5 + $0x68] sm:$0xff]  ;;  %v75_v6 = vld [vmem:[#allocation5 + $0xe0] sm:$0xff]  ;;  %v74_v8 = vld [vmem:[#allocation5 + $0xd8] sm:$0xff]  ;;  %s299_s28 = scalar_lea.vmem %s169_s27, 256  ;;  %p304_p11 = scmp.lt.s32.totalorder %s169_s27, %s169_s27 }
  0x20   :  { %184 = vmatprep.subr.mxu0 %v77_v2  ;;  %221 = vmatprep.subr.mxu1 %v77_v2  ;;  %v59_v7 = vld [vmem:[#allocation5 + $0x60] sm:$0xff]  ;;  %v58_v9 = vld [vmem:[#allocation5 + $0x58] sm:$0xff]  ;;  %v73_v10 = vld [vmem:[#allocation5 + $0xd0] sm:$0xff]  ;;  %p300_p10 = scmp.ne.s32.totalorder %s169_s27, %s299_s28  ;;  %p305_p12 = scmp.lt.s32.totalorder %s299_s28, %s299_s28 }
  0x21   :  { %185 = vmatpush3.msra.mxu0 %v61_v3  ;;  %237 = vmatpush3.msra.mxu1 %v61_v3  ;;  %v57_v11 = vld [vmem:[#allocation5 + $0x50] sm:$0xff]  ;;  %v72_v12 = vld [vmem:[#allocation5 + $0xc8] sm:$0xff]  ;;  %v71_v14 = vld [vmem:[#allocation5 + $0xc0] sm:$0xff] }
  0x22   :  { %186 = vmatprep.subr.mxu0 %v76_v4  ;;  %222 = vmatprep.subr.mxu1 %v76_v4  ;;  %v56_v13 = vld [vmem:[#allocation5 + $0x48] sm:$0xff]  ;;  %v55_v15 = vld [vmem:[#allocation5 + $0x40] sm:$0xff]  ;;  %v70_v16 = vld [vmem:[#allocation5 + $0xb8] sm:$0xff]  ;;  %p306_p13 = por %p305_p12, %p304_p11 }
  0x23   :  { %187 = vmatpush3.msra.mxu0 %v60_v5  ;;  %238 = vmatpush3.msra.mxu1 %v60_v5  ;;  %v54_v17 = vld [vmem:[#allocation5 + $0x38] sm:$0xff]  ;;  %v69_v18 = vld [vmem:[#allocation5 + $0xb0] sm:$0xff]  ;;  %v68_v20 = vld [vmem:[#allocation5 + $0xa8] sm:$0xff] }
  0x24   :  { %188 = vmatprep.subr.mxu0 %v75_v6  ;;  %223 = vmatprep.subr.mxu1 %v75_v6  ;;  %v53_v19 = vld [vmem:[#allocation5 + $0x30] sm:$0xff]  ;;  %v52_v21 = vld [vmem:[#allocation5 + $0x28] sm:$0xff]  ;;  %v67_v22 = vld [vmem:[#allocation5 + $0xa0] sm:$0xff]  ;;  %p307_p0 = pnand %p306_p13, %p300_p10 }
  0x25   :  { %189 = vmatpush3.msra.mxu0 %v59_v7  ;;  %239 = vmatpush3.msra.mxu1 %v59_v7  ;;  %v51_v23 = vld [vmem:[#allocation5 + $0x20] sm:$0xff]  ;;  %v66_v24 = vld [vmem:[#allocation5 + $0x98] sm:$0xff]  ;;  %v65_v26 = vld [vmem:[#allocation5 + $0x90] sm:$0xff] }
  0x26   :  { %190 = vmatprep.subr.mxu0 %v74_v8  ;;  %224 = vmatprep.subr.mxu1 %v74_v8  ;;  %v50_v25 = vld [vmem:[#allocation5 + $0x18] sm:$0xff]  ;;  %v49_v27 = vld [vmem:[#allocation5 + $0x10] sm:$0xff]  ;;  %v64_v28 = vld [vmem:[#allocation5 + $0x88] sm:$0xff] }
  0x27   :  { %191 = vmatpush3.msra.mxu0 %v58_v9  ;;  %240 = vmatpush3.msra.mxu1 %v58_v9  ;;  %v48_v29 = vld [vmem:[#allocation5 + $0x8] sm:$0xff]  ;;  %v63_v30 = vld [vmem:[#allocation5 + $0x80] sm:$0xff]  ;;  %v46_v33 = vld [vmem:[#allocation2 + $0x18] sm:$0xff] }
  0x28   :  { %192 = vmatprep.subr.mxu0 %v73_v10  ;;  %225 = vmatprep.subr.mxu1 %v73_v10  ;;  %v47_v31 = vld [vmem:[#allocation5] sm:$0xff]  ;;  %v44_v32 = vld [vmem:[#allocation2 + $0x8] sm:$0xff]  ;;  %v45_v35 = vld [vmem:[#allocation2 + $0x10] sm:$0xff] }
  0x29   :  { %193 = vmatpush3.msra.mxu0 %v57_v11  ;;  %241 = vmatpush3.msra.mxu1 %v57_v11  ;;  %v43_v34 = vld [vmem:[#allocation2] sm:$0xff] }
  0x2a   :  { %194 = vmatprep.subr.mxu0 %v72_v12  ;;  %226 = vmatprep.subr.mxu1 %v72_v12  ;;  %v181_v38 = vld [vmem:[%s372_s2] ss:$0 sm:$0xff] }
  0x2b   :  { %195 = vmatpush3.msra.mxu0 %v56_v13  ;;  %242 = vmatpush3.msra.mxu1 %v56_v13 }
  0x2c   :  { %196 = vmatprep.subr.mxu0 %v71_v14  ;;  %227 = vmatprep.subr.mxu1 %v71_v14 }
  0x2d   :  { %197 = vmatpush3.msra.mxu0 %v55_v15  ;;  %243 = vmatpush3.msra.mxu1 %v55_v15 }
  0x2e   :  { %198 = vmatprep.subr.mxu0 %v70_v16  ;;  %228 = vmatprep.subr.mxu1 %v70_v16 }
  0x2f   :  { %199 = vmatpush3.msra.mxu0 %v54_v17  ;;  %244 = vmatpush3.msra.mxu1 %v54_v17 }
  0x30   :  { %200 = vmatprep.subr.mxu0 %v69_v18  ;;  %229 = vmatprep.subr.mxu1 %v69_v18 }
  0x31   :  { %201 = vmatpush3.msra.mxu0 %v53_v19  ;;  %245 = vmatpush3.msra.mxu1 %v53_v19 }
  0x32   :  { %202 = vmatprep.subr.mxu0 %v68_v20  ;;  %230 = vmatprep.subr.mxu1 %v68_v20 }
  0x33   :  { %203 = vmatpush3.msra.mxu0 %v52_v21  ;;  %246 = vmatpush3.msra.mxu1 %v52_v21 }
  0x34   :  { %204 = vmatprep.subr.mxu0 %v67_v22  ;;  %231 = vmatprep.subr.mxu1 %v67_v22 }
  0x35   :  { %205 = vmatpush3.msra.mxu0 %v51_v23  ;;  %247 = vmatpush3.msra.mxu1 %v51_v23 }
  0x36   :  { %206 = vmatprep.subr.mxu0 %v66_v24  ;;  %232 = vmatprep.subr.mxu1 %v66_v24 }
  0x37   :  { %207 = vmatpush3.msra.mxu0 %v50_v25  ;;  %248 = vmatpush3.msra.mxu1 %v50_v25 }
  0x38   :  { %208 = vmatprep.subr.mxu0 %v65_v26  ;;  %233 = vmatprep.subr.mxu1 %v65_v26 }
  0x39   :  { %209 = vmatpush3.msra.mxu0 %v49_v27  ;;  %249 = vmatpush3.msra.mxu1 %v49_v27 }
  0x3a   :  { %210 = vmatprep.subr.mxu0 %v64_v28  ;;  %234 = vmatprep.subr.mxu1 %v64_v28 }
  0x3b   :  { %211 = vmatpush3.msra.mxu0 %v48_v29  ;;  %250 = vmatpush3.msra.mxu1 %v48_v29 }
  0x3c   :  { %212 = vmatprep.subr.mxu0 %v63_v30  ;;  %235 = vmatprep.subr.mxu1 %v63_v30 }
  0x3d   :  { %213 = vmatpush3.msra.mxu0 %v47_v31  ;;  %251 = vmatpush3.msra.mxu1 %v47_v31 }
  0x3e   :  { %150 = vmatprep.mubr.f32.mxu0 %v44_v32  ;;  %155 = vmatprep.mubr.f32.mxu1 %v46_v33 }
  0x3f   :  { %151 = vmatmul.mubr.f32.vlgmr.msra.gmra.mxu0 %v43_v34  ;;  %156 = vmatmul.mubr.f32.vlgmr.msra.gmra.mxu1 %v45_v35 }
  0xff   :  { %v214_v36 = vpop.f32.mrf.mxu0  ;;  %v217_v37 = vpop.f32.mrf.mxu1 }
 0x101   :  { %v215_v39 = vpop.f32.mrf.mxu0  ;;  %v218_v40 = vpop.f32.mrf.mxu1 }
 0x102   :  { %v216_v41 = vadd.f32 %v215_v39, %v214_v36  ;;  %v219_v42 = vadd.f32 %v218_v40, %v217_v37 }
 0x104   :  { %v153_v43 = vadd.f32 %v216_v41, %v181_v38  ;;  %v158_v44 = vadd.f32 %v219_v42, %v181_v38 }
 0x106   :  { %161 = vst [vmem:[#allocation7] sm:$0xff] %v153_v43  ;;  %162 = vst [vmem:[#allocation7 + $0x8] sm:$0xff] %v158_v44 }
 0x107   :  { %310 = shalt.err (!%p307_p0)
}
 0x108   :  { %174 = dma.vmem_to_hbm [thread:$0]  %s169_s27, 256, %s373_s3, [#allocation4], %s329_s22, %s329_s22, %s330_s23  }
 0x109   :  { %323 = dma.done.wait [#allocation4], 256  }
 0x10a   :  { %324 = vsyncadd [#allocation4], 4294967040 }
 0x10b   :  { %178 = vsyncpa [#allocation3], 1 }
 0x10c   :  { %179 = vsyncpa [#allocation6], 1 }
 0x10d   :  { %180 = vsyncpa [#allocation4], 1 }

</bundles_post_ra>
